<compile_context>
chip_gen: v6e
topology: v6e:2x2x1
jax: 0.10.0
libtpu: 0.0.40
codegen_flags: <defaults>
</compile_context>

<pallas_src>
import jax
import jax.numpy as jnp
from jax.experimental import pallas as pl
from jax.experimental.pallas import tpu as pltpu

IN_FEATURES = 300
OUT_FEATURES = 4
LANE = 128          # TPU lane width
TILE_N = 4096       # rows of x per grid step; multiple of 128


def _round_up(x, m):
    return ((x + m - 1) // m) * m


def _net_kernel(x_ref, w_ref, o_ref):
    # x_ref: (tile, 300) f32  -- one batch slab
    # w_ref: (300, 128) f32   -- Linear weight transposed, zero-padded 4 -> 128
    # o_ref: (4, tile)  f32   -- lane-dense softmax output (transposed in wrapper)

    # MXU matmul, f32 accumulation.  x streams as the LHS; the tiny weight is
    # the stationary RHS -- the efficient MXU orientation.
    logits = jnp.dot(
        x_ref[...], w_ref[...], preferred_element_type=jnp.float32
    )  # (tile, 128); columns 4..127 are exact zeros (zero-padded weight)

    # Lane-dense relayout: (tile, 128) -> (128, tile) is a fully (8,128)-aligned
    # f32 transpose (XLU slot, hides under the x DMA); keep the 4 real classes.
    logits_t = jnp.transpose(logits)[:OUT_FEATURES, :]  # (4, tile)

    # Numerically-stable softmax over the class axis (sublane axis => cheap).
    m = jnp.max(logits_t, axis=0, keepdims=True)       # (1, tile)
    e = jnp.exp(logits_t - m)                           # (4, tile)
    denom = jnp.sum(e, axis=0, keepdims=True)           # (1, tile)
    inv = pl.reciprocal(denom, approx=False)            # exact (keeps fp32 semantics)
    o_ref[...] = (e * inv).astype(o_ref.dtype)


def net_forward(x, w, *, tile_n=TILE_N):
    """x: (N, 300) f32, w: (4, 300) f32 (PyTorch Linear layout) -> (N, 4) f32."""
    n = x.shape[0]

    # (300, 128) weight: cols 0..3 hold w.T, cols 4..127 are zero.  Tiny,
    # one-off wrapper op (150 KB), keeps the in-kernel transpose tile-aligned.
    w_pad = jnp.zeros((IN_FEATURES, LANE), jnp.float32)
    w_pad = w_pad.at[:, :OUT_FEATURES].set(w.T.astype(jnp.float32))

    # Row tile: multiple of 128, capped at tile_n.  No batch padding / extra
    # HBM pass -- Pallas masks the ragged final block.
    eff_tile = min(tile_n, _round_up(max(n, 1), LANE))
    grid = (pl.cdiv(n, eff_tile),)

    cost = pl.CostEstimate(
        flops=2 * n * IN_FEATURES * LANE,
        transcendentals=(OUT_FEATURES + 1) * n,
        bytes_accessed=(
            n * IN_FEATURES * 4            # x read
            + n * OUT_FEATURES * 4         # output write
            + IN_FEATURES * LANE * 4       # padded weight
        ),
    )

    out_t = pl.pallas_call(
        _net_kernel,
        out_shape=jax.ShapeDtypeStruct((OUT_FEATURES, n), jnp.float32),
        grid_spec=pltpu.PrefetchScalarGridSpec(
            num_scalar_prefetch=0,
            grid=grid,
            in_specs=[
                # x: one row slab per grid step, default double-buffering.
                pl.BlockSpec((eff_tile, IN_FEATURES), lambda i: (i, 0)),
                # weight: constant block index -> stays resident in VMEM.
                pl.BlockSpec((IN_FEATURES, LANE), lambda i: (0, 0)),
            ],
            # Lane-dense output block: full, unmasked stores + contiguous DMA.
            out_specs=pl.BlockSpec((OUT_FEATURES, eff_tile), lambda i: (0, i)),
        ),
        compiler_params=pltpu.CompilerParams(
            # Independent row tiles -> shard across TCs on v7x megacore.
            # (If profiling shows one TC idle, switch to pltpu.CORE_PARALLEL.)
            dimension_semantics=("parallel",),
            # Padded-shape VMEM budget at tile=4096 is ~17.5 MiB (see header);
            # raise the scoped limit above v5e's 16 MiB default.
            vmem_limit_bytes=32 << 20,
        ),
        cost_estimate=cost,
    )(x, w_pad)

    # (4, N) -> (N, 4): 16 B/row vs. the 1200 B/row x read -- negligible.
    return out_t.T


def init_params(key):
    # nn.Linear default init: U(-1/sqrt(fan_in), 1/sqrt(fan_in)); weight (out, in).
    bound = 1.0 / (IN_FEATURES ** 0.5)
    return jax.random.uniform(
        key, (OUT_FEATURES, IN_FEATURES), jnp.float32, minval=-bound, maxval=bound
    )


def _reference(x, w):
    return jax.nn.softmax(x @ w.T, axis=1)


if __name__ == "__main__":
    key = jax.random.PRNGKey(0)
    k_w, k_x1, k_x2 = jax.random.split(key, 3)

    w = init_params(k_w)  # (4, 300), PyTorch Linear layout

    # Small demo batch (module spec: Linear(300, 4) + softmax over dim=1).
    batch = 8
    x = jax.random.normal(k_x1, (batch, IN_FEATURES), jnp.float32)  # (8, 300)
    out = jax.block_until_ready(net_forward(x, w))
    assert out.shape == (batch, OUT_FEATURES)
    assert bool(jnp.allclose(jnp.sum(out, axis=1), 1.0, atol=1e-5))
    assert bool(jnp.allclose(out, _reference(x, w), atol=2e-5, rtol=2e-5))

    # Multi-tile + ragged-final-block path (no full-tile padding in the wrapper).
    batch2 = TILE_N + 37
    x2 = jax.random.normal(k_x2, (batch2, IN_FEATURES), jnp.float32)
    out2 = jax.block_until_ready(net_forward(x2, w))
    assert out2.shape == (batch2, OUT_FEATURES)
    assert bool(jnp.allclose(jnp.sum(out2, axis=1), 1.0, atol=1e-5))
    assert bool(jnp.allclose(out2, _reference(x2, w), atol=2e-5, rtol=2e-5))

    print("KERNEL_OK")
</pallas_src>

<mosaic_0001>
module attributes {stable_mosaic.version = 11 : i64} {
  func.func @_net_kernel(%arg0: i32, %arg1: memref<128x300xf32, #tpu.memory_space<vmem>>, %arg2: memref<300x128xf32, #tpu.memory_space<vmem>>, %arg3: memref<4x128xf32, #tpu.memory_space<vmem>>) attributes {dimension_semantics = [#tpu.dimension_semantics<parallel>], iteration_bounds = array<i64: 1>, scalar_prefetch = 0 : i64, scratch_operands = 0 : i64, tpu.core_type = #tpu.core_type<tc>, window_params = [{transform_indices = @transform_0, window_bounds = array<i64: 128, 300>}, {pipeline_mode = #tpu.pipeline_mode<synchronous>, transform_indices = @transform_1, window_bounds = array<i64: 300, 128>}, {transform_indices = @transform_2, window_bounds = array<i64: 4, 128>}]} {
    %c0 = arith.constant 0 : index
    %c0_0 = arith.constant 0 : index
    %0 = vector.load %arg1[%c0, %c0_0] : memref<128x300xf32, #tpu.memory_space<vmem>>, vector<128x300xf32>
    %c0_1 = arith.constant 0 : index
    %c0_2 = arith.constant 0 : index
    %1 = vector.load %arg2[%c0_1, %c0_2] : memref<300x128xf32, #tpu.memory_space<vmem>>, vector<300x128xf32>
    %cst = arith.constant dense<0.000000e+00> : vector<128x128xf32>
    %2 = tpu.matmul %0, %1, %cst {dimension_numbers = #tpu.dot_dimension_numbers<[1], [0], [0], [1], [0, 0, 1, 1], [], []>} : vector<128x300xf32>, vector<300x128xf32>, vector<128x128xf32> -> vector<128x128xf32>
    %3 = tpu.transpose %2, [1, 0] : vector<128x128xf32> -> vector<128x128xf32>
    %4 = vector.extract_strided_slice %3 {offsets = [0, 0], sizes = [4, 128], strides = [1, 1]} : vector<128x128xf32> to vector<4x128xf32>
    %cst_3 = arith.constant dense<0xFF800000> : vector<128xf32>
    %5 = vector.multi_reduction <maximumf>, %4, %cst_3 [0] : vector<4x128xf32> to vector<128xf32>
    %6 = vector.shape_cast %5 : vector<128xf32> to vector<1x128xf32>
    %7 = vector.broadcast %6 : vector<1x128xf32> to vector<4x128xf32>
    %8 = arith.subf %4, %7 : vector<4x128xf32>
    %9 = math.exp %8 : vector<4x128xf32>
    %cst_4 = arith.constant dense<0.000000e+00> : vector<128xf32>
    %10 = vector.multi_reduction <add>, %9, %cst_4 [0] : vector<4x128xf32> to vector<128xf32>
    %11 = vector.shape_cast %10 : vector<128xf32> to vector<1x128xf32>
    %12 = tpu.reciprocal %11 : vector<1x128xf32> -> vector<1x128xf32>
    %13 = vector.broadcast %12 : vector<1x128xf32> to vector<4x128xf32>
    %14 = arith.mulf %9, %13 : vector<4x128xf32>
    %c0_5 = arith.constant 0 : index
    %c0_6 = arith.constant 0 : index
    %15 = vector.load %arg3[%c0_5, %c0_6] : memref<4x128xf32, #tpu.memory_space<vmem>>, vector<4x128xf32>
    tpu.vector_store %arg3[%c0_5, %c0_6], %14 {strides = array<i32>} : memref<4x128xf32, #tpu.memory_space<vmem>>, vector<4x128xf32>,
    return
  }
  func.func @transform_0(%arg0: i32) -> (i32, i32) {
    %c0_i32 = arith.constant 0 : i32
    %c0_i32_0 = arith.constant 0 : i32
    return %arg0, %c0_i32 : i32, i32
  }
  func.func @transform_1(%arg0: i32) -> (i32, i32) {
    %c0_i32 = arith.constant 0 : i32
    %c0_i32_0 = arith.constant 0 : i32
    %c0_i32_1 = arith.constant 0 : i32
    return %c0_i32, %c0_i32_0 : i32, i32
  }
  func.func @transform_2(%arg0: i32) -> (i32, i32) {
    %c0_i32 = arith.constant 0 : i32
    %c0_i32_0 = arith.constant 0 : i32
    return %c0_i32, %arg0 : i32, i32
  }
}

</mosaic_0001>

<bundles_post_ra>
// kernel: tpu_custom_call.1
= control target key start
LH: loop header
LB: loop body
LE: loop exit
PB: predicated region body
PF: predicated region fallthrough
CT: control target
= control target key end

     0   :  { %7 = vsyncpa [#allocation3], 0  ;;  %s876_s0 = inlined_call_operand.hbm [shape: f32[8,300], index: 0, kind: input, shape index: {}]   ;;  %s877_s1 = inlined_call_operand.hbm [shape: f32[300,128], index: 1, kind: input, shape index: {}]   ;;  %s878_s2 = inlined_call_operand.hbm [shape: f32[4,8], index: 2, kind: output, shape index: {}]  }
   0x1   :  { %8 = vsyncpa [#allocation6], 0 }
   0x2   :  { %9 = vsyncpa [#allocation4], 0 }
   0x3   :  { %14 = vsyncadd [#allocation3], 5760  ;;  %s801_s9 = smov [#allocation2]  }
   0x4   :  { %s15_s10 = sshll.u32 %s801_s9, 4  ;;  %s16_s10 = int_to_ptr.vmem [resolvable:$true] %s15_s10 }
   0x5   :  { %s743_s11 = scalar_lea.vmem %s16_s10, 384  ;;  %s747_s12 = scalar_lea.vmem %s16_s10, 6144 }
   0x6   :  { %p744_p0 = scmp.ne.s32.totalorder %s16_s10, %s743_s11  ;;  %p748_p1 = scmp.lt.s32.totalorder %s16_s10, %s16_s10 }
   0x7   :  { %p749_p2 = scmp.lt.s32.totalorder %s747_s12, %s743_s11 }
   0x9   :  { %p750_p3 = por %p749_p2, %p748_p1 }
   0xb   :  { %p751_p4 = pnand %p750_p3, %p744_p0 }
   0xd   :  { %754 = shalt.err (!%p751_p4)
}
   0xe   :  { %s802_s13 = smov 384   ;;  %s803_s14 = smov 24  }
   0xf   :  { %21 = dma.hbm_to_vmem [thread:$0]  %s876_s0, 384, %s16_s10, [#allocation3], %s802_s13, %s802_s13, %s803_s14  }
  0x10   :  { %s804_s17 = smov [#allocation5]  }
  0x11   :  { %s27_s18 = sshll.u32 %s804_s17, 4  ;;  %s28_s18 = int_to_ptr.vmem [resolvable:$true] %s27_s18 }
  0x12   :  { %s763_s19 = scalar_lea.vmem %s28_s18, 4864  ;;  %p768_p6 = scmp.lt.s32.totalorder %s28_s18, %s28_s18 }
  0x13   :  { %p764_p5 = scmp.ne.s32.totalorder %s28_s18, %s763_s19  ;;  %p769_p7 = scmp.lt.s32.totalorder %s763_s19, %s763_s19 }
  0x15   :  { %p770_p8 = por %p769_p7, %p768_p6 }
  0x17   :  { %p771_p9 = pnand %p770_p8, %p764_p5 }
  0x19   :  { %774 = shalt.err (!%p771_p9)
}
  0x1a   :  { %s805_s20 = smov 128   ;;  %s806_s21 = smov 8  }
  0x1b   :  { %33 = dma.hbm_to_vmem [thread:$0]  %s877_s1, 4864, %s28_s18, [#allocation6], %s805_s20, %s805_s20, %s806_s21  }
  0x1c   :  { %795 = dma.done.wait [#allocation3], 6144  }
  0x1d   :  { %796 = vsyncadd [#allocation3], 4294961152 }
  0x1e   :  { %797 = dma.done.wait [#allocation6], 4864  }
  0x1f   :  { %798 = vsyncadd [#allocation6], 4294962432  ;;  %v119_v0 = vld [vmem:[#allocation5 + $0xf8] sm:$0xff]  ;;  %v118_v2 = vld [vmem:[#allocation5 + $0xf0] sm:$0xff]  ;;  %vm175_vm0 = vcmask 1043456   ;;  %vm126_vm1 = vcmask 359424  }
  0x20   :  { %v103_v1 = vld [vmem:[#allocation5 + $0x78] sm:$0xff]  ;;  %692 = vmatprep.subr.mxu1 %v119_v0  ;;  %v102_v3 = vld [vmem:[#allocation5 + $0x70] sm:$0xff]  ;;  %554 = vmatprep.subr.mxu0 %v119_v0  ;;  %v117_v4 = vld [vmem:[#allocation5 + $0xe8] sm:$0xff]  ;;  %s807_s0 = smov [#allocation7]  }
  0x21   :  { %708 = vmatpush3.msra.mxu1 %v103_v1  ;;  %555 = vmatpush3.msra.mxu0 %v103_v1  ;;  %v101_v5 = vld [vmem:[#allocation5 + $0x68] sm:$0xff]  ;;  %v116_v6 = vld [vmem:[#allocation5 + $0xe0] sm:$0xff]  ;;  %v115_v8 = vld [vmem:[#allocation5 + $0xd8] sm:$0xff]  ;;  %s527_s1 = sshll.u32 %s807_s0, 4  ;;  %s528_s1 = int_to_ptr.vmem [resolvable:$true] %s527_s1 }
  0x22   :  { %693 = vmatprep.subr.mxu1 %v118_v2  ;;  %556 = vmatprep.subr.mxu0 %v118_v2  ;;  %v100_v7 = vld [vmem:[#allocation5 + $0x60] sm:$0xff]  ;;  %v99_v9 = vld [vmem:[#allocation5 + $0x58] sm:$0xff]  ;;  %v114_v10 = vld [vmem:[#allocation5 + $0xd0] sm:$0xff]  ;;  %s775_s24 = scalar_lea.vmem %s528_s1, 64  ;;  %p780_p11 = scmp.lt.s32.totalorder %s528_s1, %s528_s1 }
  0x23   :  { %709 = vmatpush3.msra.mxu1 %v102_v3  ;;  %557 = vmatpush3.msra.mxu0 %v102_v3  ;;  %v98_v11 = vld [vmem:[#allocation5 + $0x50] sm:$0xff]  ;;  %v113_v12 = vld [vmem:[#allocation5 + $0xc8] sm:$0xff]  ;;  %v112_v14 = vld [vmem:[#allocation5 + $0xc0] sm:$0xff]  ;;  %p776_p10 = scmp.ne.s32.totalorder %s528_s1, %s775_s24  ;;  %p781_p12 = scmp.lt.s32.totalorder %s775_s24, %s775_s24 }
  0x24   :  { %694 = vmatprep.subr.mxu1 %v117_v4  ;;  %558 = vmatprep.subr.mxu0 %v117_v4  ;;  %v97_v13 = vld [vmem:[#allocation5 + $0x48] sm:$0xff]  ;;  %v96_v15 = vld [vmem:[#allocation5 + $0x40] sm:$0xff]  ;;  %v111_v16 = vld [vmem:[#allocation5 + $0xb8] sm:$0xff] }
  0x25   :  { %710 = vmatpush3.msra.mxu1 %v101_v5  ;;  %559 = vmatpush3.msra.mxu0 %v101_v5  ;;  %v95_v17 = vld [vmem:[#allocation5 + $0x38] sm:$0xff]  ;;  %v110_v18 = vld [vmem:[#allocation5 + $0xb0] sm:$0xff]  ;;  %v109_v20 = vld [vmem:[#allocation5 + $0xa8] sm:$0xff]  ;;  %p782_p13 = por %p781_p12, %p780_p11 }
  0x26   :  { %695 = vmatprep.subr.mxu1 %v116_v6  ;;  %560 = vmatprep.subr.mxu0 %v116_v6  ;;  %v94_v19 = vld [vmem:[#allocation5 + $0x30] sm:$0xff]  ;;  %v93_v21 = vld [vmem:[#allocation5 + $0x28] sm:$0xff]  ;;  %v108_v22 = vld [vmem:[#allocation5 + $0xa0] sm:$0xff] }
  0x27   :  { %711 = vmatpush3.msra.mxu1 %v100_v7  ;;  %561 = vmatpush3.msra.mxu0 %v100_v7  ;;  %v92_v23 = vld [vmem:[#allocation5 + $0x20] sm:$0xff]  ;;  %v77_v24 = vld [vmem:[#allocation2 + $0x128] sm:$0xff]  ;;  %v107_v25 = vld [vmem:[#allocation5 + $0x98] sm:$0xff]  ;;  %p783_p0 = pnand %p782_p13, %p776_p10 }
  0x28   :  { %696 = vmatprep.subr.mxu1 %v115_v8  ;;  %562 = vmatprep.subr.mxu0 %v115_v8  ;;  %v91_v26 = vld [vmem:[#allocation5 + $0x18] sm:$0xff]  ;;  %v106_v27 = vld [vmem:[#allocation5 + $0x90] sm:$0xff]  ;;  %v105_v29 = vld [vmem:[#allocation5 + $0x88] sm:$0xff] }
  0x29   :  { %712 = vmatpush3.msra.mxu1 %v99_v9  ;;  %563 = vmatpush3.msra.mxu0 %v99_v9  ;;  %v90_v28 = vld [vmem:[#allocation5 + $0x10] sm:$0xff]  ;;  %v89_v30 = vld [vmem:[#allocation5 + $0x8] sm:$0xff]  ;;  %v104_v31 = vld [vmem:[#allocation5 + $0x80] sm:$0xff] }
  0x2a   :  { %697 = vmatprep.subr.mxu1 %v114_v10  ;;  %564 = vmatprep.subr.mxu0 %v114_v10  ;;  %v88_v32 = vld [vmem:[#allocation5] sm:$0xff]  ;;  %v125_v34 = vld [vmem:[#allocation5 + $0x128] sm:$0xf]  ;;  %v79_v38 = vld [vmem:[#allocation2 + $0x138] sm:$0xff] }
  0x2b   :  { %713 = vmatpush3.msra.mxu1 %v98_v11  ;;  %565 = vmatpush3.msra.mxu0 %v98_v11  ;;  %v76_v33 = vld [vmem:[#allocation2 + $0x120] sm:$0xff]  ;;  %v41_v37 = vld [vmem:[#allocation2 + $0x8] sm:$0xff]  ;;  %v123_v39 = vld [vmem:[#allocation5 + $0x118] sm:$0xff] }
  0x2c   :  { %698 = vmatprep.subr.mxu1 %v113_v12  ;;  %566 = vmatprep.subr.mxu0 %v113_v12  ;;  %v80_v35 = vld [vmem:[#allocation2 + $0x140] sm:$0xff]  ;;  %v83_v40 = vld [vmem:[#allocation2 + $0x158] sm:$0xff]  ;;  %v122_v41 = vld [vmem:[#allocation5 + $0x110] sm:$0xff] }
  0x2d   :  { %714 = vmatpush3.msra.mxu1 %v97_v13  ;;  %567 = vmatpush3.msra.mxu0 %v97_v13  ;;  %v124_v36 = vld [vmem:[#allocation5 + $0x120] sm:$0xff]  ;;  %v82_v44 = vld [vmem:[#allocation2 + $0x150] sm:$0xff]  ;;  %v121_v45 = vld [vmem:[#allocation5 + $0x108] sm:$0xff] }
  0x2e   :  { %699 = vmatprep.subr.mxu1 %v112_v14  ;;  %568 = vmatprep.subr.mxu0 %v112_v14  ;;  %v40_v42 = vld [vmem:[#allocation2] sm:$0xff]  ;;  %v86_v46 = vld [vmem:[#allocation2 + $0x170] sm:$0xff]  ;;  %v43_v47 = vld [vmem:[#allocation2 + $0x18] sm:$0xff] }
  0x2f   :  { %715 = vmatpush3.msra.mxu1 %v96_v15  ;;  %569 = vmatpush3.msra.mxu0 %v96_v15  ;;  %v44_v43 = vld [vmem:[#allocation2 + $0x20] sm:$0xff]  ;;  %v47_v49 = vld [vmem:[#allocation2 + $0x38] sm:$0xff]  ;;  %v85_v50 = vld [vmem:[#allocation2 + $0x168] sm:$0xff] }
  0x30   :  { %700 = vmatprep.subr.mxu1 %v111_v16  ;;  %570 = vmatprep.subr.mxu0 %v111_v16  ;;  %v120_v48 = vld [vmem:[#allocation5 + $0x100] sm:$0xff]  ;;  %v42_v51 = vld [vmem:[#allocation2 + $0x10] sm:$0xff]  ;;  %v45_v54 = vld [vmem:[#allocation2 + $0x28] sm:$0xff] }
  0x31   :  { %716 = vmatpush3.msra.mxu1 %v95_v17  ;;  %571 = vmatpush3.msra.mxu0 %v95_v17  ;;  %v46_v52 = vld [vmem:[#allocation2 + $0x30] sm:$0xff]  ;;  %v48_v55 = vld [vmem:[#allocation2 + $0x40] sm:$0xff]  ;;  %v49_v56 = vld [vmem:[#allocation2 + $0x48] sm:$0xff] }
  0x32   :  { %701 = vmatprep.subr.mxu1 %v110_v18  ;;  %572 = vmatprep.subr.mxu0 %v110_v18  ;;  %v50_v53 = vld [vmem:[#allocation2 + $0x50] sm:$0xff]  ;;  %v53_v57 = vld [vmem:[#allocation2 + $0x68] sm:$0xff]  ;;  %v51_v58 = vld [vmem:[#allocation2 + $0x58] sm:$0xff] }
  0x33   :  { %717 = vmatpush3.msra.mxu1 %v94_v19  ;;  %573 = vmatpush3.msra.mxu0 %v94_v19  ;;  %v54_v59 = vld [vmem:[#allocation2 + $0x70] sm:$0xff]  ;;  %v52_v60 = vld [vmem:[#allocation2 + $0x60] sm:$0xff]  ;;  %v57_v62 = vld [vmem:[#allocation2 + $0x88] sm:$0xff] }
  0x34   :  { %702 = vmatprep.subr.mxu1 %v109_v20  ;;  %574 = vmatprep.subr.mxu0 %v109_v20  ;;  %v56_v61 = vld [vmem:[#allocation2 + $0x80] sm:$0xff]  ;;  %v55_v0 = vld [vmem:[#allocation2 + $0x78] sm:$0xff]  ;;  %v66_v3 = vld [vmem:[#allocation2 + $0xd0] sm:$0xff] }
  0x35   :  { %718 = vmatpush3.msra.mxu1 %v93_v21  ;;  %575 = vmatpush3.msra.mxu0 %v93_v21  ;;  %v60_v63 = vld [vmem:[#allocation2 + $0xa0] sm:$0xff]  ;;  %v59_v1 = vld [vmem:[#allocation2 + $0x98] sm:$0xff]  ;;  %v58_v4 = vld [vmem:[#allocation2 + $0x90] sm:$0xff] }
  0x36   :  { %703 = vmatprep.subr.mxu1 %v108_v22  ;;  %576 = vmatprep.subr.mxu0 %v108_v22  ;;  %v63_v2 = vld [vmem:[#allocation2 + $0xb8] sm:$0xff]  ;;  %v62_v5 = vld [vmem:[#allocation2 + $0xb0] sm:$0xff]  ;;  %v69_v6 = vld [vmem:[#allocation2 + $0xe8] sm:$0xff] }
  0x37   :  { %719 = vmatpush3.msra.mxu1 %v92_v23  ;;  %303 = vmatprep.mubr.f32.mxu1 %v77_v24  ;;  %v72_v7 = vld [vmem:[#allocation2 + $0x100] sm:$0xff]  ;;  %v61_v8 = vld [vmem:[#allocation2 + $0xa8] sm:$0xff]  ;;  %v75_v10 = vld [vmem:[#allocation2 + $0x118] sm:$0xff] }
  0x38   :  { %704 = vmatprep.subr.mxu1 %v107_v25  ;;  %577 = vmatpush3.msra.mxu0 %v92_v23  ;;  %v65_v9 = vld [vmem:[#allocation2 + $0xc8] sm:$0xff]  ;;  %v78_v11 = vld [vmem:[#allocation2 + $0x130] sm:$0xff]  ;;  %v64_v12 = vld [vmem:[#allocation2 + $0xc0] sm:$0xff] }
  0x39   :  { %720 = vmatpush3.msra.mxu1 %v91_v26  ;;  %578 = vmatprep.subr.mxu0 %v107_v25  ;;  %v68_v13 = vld [vmem:[#allocation2 + $0xe0] sm:$0xff]  ;;  %v81_v14 = vld [vmem:[#allocation2 + $0x148] sm:$0xff]  ;;  %v67_v16 = vld [vmem:[#allocation2 + $0xd8] sm:$0xff] }
  0x3a   :  { %705 = vmatprep.subr.mxu1 %v106_v27  ;;  %579 = vmatpush3.msra.mxu0 %v91_v26  ;;  %v84_v15 = vld [vmem:[#allocation2 + $0x160] sm:$0xff]  ;;  %v71_v17 = vld [vmem:[#allocation2 + $0xf8] sm:$0xff]  ;;  %v70_v19 = vld [vmem:[#allocation2 + $0xf0] sm:$0xff] }
  0x3b   :  { %721 = vmatpush3.msra.mxu1 %v90_v28  ;;  %580 = vmatprep.subr.mxu0 %v106_v27  ;;  %v87_v18 = vld [vmem:[#allocation2 + $0x178] sm:$0xff]  ;;  %v74_v20 = vld [vmem:[#allocation2 + $0x110] sm:$0xff]  ;;  %v73_v21 = vld [vmem:[#allocation2 + $0x108] sm:$0xff] }
  0x3c   :  { %706 = vmatprep.subr.mxu1 %v105_v29  ;;  %581 = vmatpush3.msra.mxu0 %v90_v28 }
  0x3d   :  { %722 = vmatpush3.msra.mxu1 %v89_v30  ;;  %582 = vmatprep.subr.mxu0 %v105_v29 }
  0x3e   :  { %707 = vmatprep.subr.mxu1 %v104_v31  ;;  %583 = vmatpush3.msra.mxu0 %v89_v30 }
  0x3f   :  { %723 = vmatpush3.msra.mxu1 %v88_v32  ;;  %584 = vmatprep.subr.mxu0 %v104_v31 }
  0x40   :  { %304 = vmatmul.mubr.f32.vlgmr.msra.gmra.mxu1 %v76_v33  ;;  %656 = vmatprep.subr.msk.mxu1 %vm175_vm0, %v125_v34 }
  0x41   :  { %657 = vmatpush3.msk.msra.mxu1 %vm175_vm0, %v125_v34  ;;  %308 = vmatprep.mubr.f32.mxu1 %v80_v35 }
  0x42   :  { %658 = vmatprep.subr.mxu1 %v124_v36  ;;  %585 = vmatpush3.msra.mxu0 %v88_v32 }
  0x43   :  { %659 = vmatpush3.msra.mxu1 %v124_v36  ;;  %243 = vmatprep.mubr.f32.mxu0 %v41_v37 }
  0x44   :  { %309 = vmatmul.mubr.f32.gmra.mxu1 %v79_v38  ;;  %660 = vmatprep.subr.mxu1 %v123_v39 }
  0x45   :  { %313 = vmatprep.mubr.f32.mxu1 %v83_v40  ;;  %661 = vmatpush3.msra.mxu1 %v123_v39 }
  0x46   :  { %662 = vmatprep.subr.mxu1 %v122_v41  ;;  %244 = vmatmul.mubr.f32.vlgmr.msra.gmra.mxu0 %v40_v42 }
  0x47   :  { %663 = vmatpush3.msra.mxu1 %v122_v41  ;;  %248 = vmatprep.mubr.f32.mxu0 %v44_v43 }
  0x48   :  { %314 = vmatmul.mubr.f32.gmra.mxu1 %v82_v44  ;;  %664 = vmatprep.subr.mxu1 %v121_v45 }
  0x49   :  { %318 = vmatprep.mubr.f32.mxu1 %v86_v46  ;;  %665 = vmatpush3.msra.mxu1 %v121_v45 }
  0x4a   :  { %249 = vmatmul.mubr.f32.gmra.mxu0 %v43_v47  ;;  %666 = vmatprep.subr.mxu1 %v120_v48 }
  0x4b   :  { %667 = vmatpush3.msra.mxu1 %v120_v48  ;;  %253 = vmatprep.mubr.f32.mxu0 %v47_v49 }
  0x4c   :  { %319 = vmatmul.mubr.f32.gmra.mxu1 %v85_v50 }
  0x4d   :  { %668 = vmatprep.mubr.msk.f32.mxu1 %vm126_vm1, %v42_v51 }
  0x4e   :  { %254 = vmatmul.mubr.f32.gmra.mxu0 %v46_v52 }
  0x4f   :  { %258 = vmatprep.mubr.f32.mxu0 %v50_v53 }
  0x50   :  { %669 = vmatmul.mubr.msk.f32.vlgmr.msra.gmra.mxu1 %vm126_vm1, %v45_v54 }
  0x51   :  { %671 = vmatprep.mubr.msk.f32.mxu1 %vm126_vm1, %v48_v55 }
  0x52   :  { %259 = vmatmul.mubr.f32.gmra.mxu0 %v49_v56 }
  0x53   :  { %263 = vmatprep.mubr.f32.mxu0 %v53_v57 }
  0x54   :  { %672 = vmatmul.mubr.msk.f32.gmra.mxu1 %vm126_vm1, %v51_v58 }
  0x55   :  { %674 = vmatprep.mubr.msk.f32.mxu1 %vm126_vm1, %v54_v59 }
  0x56   :  { %264 = vmatmul.mubr.f32.gmra.mxu0 %v52_v60 }
  0x57   :  { %268 = vmatprep.mubr.f32.mxu0 %v56_v61 }
  0x58   :  { %675 = vmatmul.mubr.msk.f32.gmra.mxu1 %vm126_vm1, %v57_v62 }
  0x59   :  { %677 = vmatprep.mubr.msk.f32.mxu1 %vm126_vm1, %v60_v63 }
  0x5a   :  { %269 = vmatmul.mubr.f32.gmra.mxu0 %v55_v0 }
  0x5b   :  { %273 = vmatprep.mubr.f32.mxu0 %v59_v1 }
  0x5c   :  { %678 = vmatmul.mubr.msk.f32.gmra.mxu1 %vm126_vm1, %v63_v2 }
  0x5d   :  { %680 = vmatprep.mubr.msk.f32.mxu1 %vm126_vm1, %v66_v3 }
  0x5e   :  { %274 = vmatmul.mubr.f32.gmra.mxu0 %v58_v4 }
  0x5f   :  { %278 = vmatprep.mubr.f32.mxu0 %v62_v5 }
  0x60   :  { %681 = vmatmul.mubr.msk.f32.gmra.mxu1 %vm126_vm1, %v69_v6 }
  0x61   :  { %683 = vmatprep.mubr.msk.f32.mxu1 %vm126_vm1, %v72_v7 }
  0x62   :  { %279 = vmatmul.mubr.f32.gmra.mxu0 %v61_v8 }
  0x63   :  { %283 = vmatprep.mubr.f32.mxu0 %v65_v9 }
  0x64   :  { %684 = vmatmul.mubr.msk.f32.gmra.mxu1 %vm126_vm1, %v75_v10 }
  0x65   :  { %686 = vmatprep.mubr.msk.f32.mxu1 %vm126_vm1, %v78_v11 }
  0x66   :  { %284 = vmatmul.mubr.f32.gmra.mxu0 %v64_v12 }
  0x67   :  { %288 = vmatprep.mubr.f32.mxu0 %v68_v13 }
  0x68   :  { %687 = vmatmul.mubr.msk.f32.gmra.mxu1 %vm126_vm1, %v81_v14 }
  0x69   :  { %689 = vmatprep.mubr.msk.f32.mxu1 %vm126_vm1, %v84_v15 }
  0x6a   :  { %289 = vmatmul.mubr.f32.gmra.mxu0 %v67_v16 }
  0x6b   :  { %293 = vmatprep.mubr.f32.mxu0 %v71_v17 }
  0x6c   :  { %690 = vmatmul.mubr.msk.f32.gmra.mxu1 %vm126_vm1, %v87_v18 }
  0x6e   :  { %294 = vmatmul.mubr.f32.gmra.mxu0 %v70_v19 }
  0x6f   :  { %298 = vmatprep.mubr.f32.mxu0 %v74_v20 }
  0x72   :  { %299 = vmatmul.mubr.f32.gmra.mxu0 %v73_v21 }
 0x100   :  { %v847_v22 = vpop.f32.mrf.mxu1 }
 0x102   :  { %v849_v23 = vpop.f32.mrf.mxu1 }
 0x104   :  { %v851_v24 = vpop.f32.mrf.mxu1 }
 0x106   :  { %v853_v25 = vpop.f32.mrf.mxu1  ;;  %v586_v26 = vpop.f32.mrf.mxu0 }
 0x108   :  { %v855_v27 = vpop.f32.mrf.mxu1  ;;  %v587_v28 = vpop.f32.mrf.mxu0 }
 0x109   :  { %v588_v37 = vadd.f32 %v587_v28, %v586_v26 }
 0x10a   :  { %v857_v29 = vpop.f32.mrf.mxu1  ;;  %v589_v30 = vpop.f32.mrf.mxu0 }
 0x10c   :  { %v859_v31 = vpop.f32.mrf.mxu1  ;;  %v590_v32 = vpop.f32.mrf.mxu0 }
 0x10d   :  { %v591_v40 = vadd.f32 %v590_v32, %v589_v30 }
 0x10e   :  { %v861_v33 = vpop.f32.mrf.mxu1  ;;  %v592_v34 = vpop.f32.mrf.mxu0 }
 0x110   :  { %v670_v35 = vpop.f32.mrf.mxu1  ;;  %v593_v36 = vpop.f32.mrf.mxu0 }
 0x111   :  { %v396_v45 = vadd.f32 %v670_v35, %v591_v40  ;;  %v594_v46 = vadd.f32 %v593_v36, %v592_v34  ;;  %v624_v36 = vadd.f32 %v849_v23, %v847_v22 }
 0x112   :  { %v390_v38 = vpop.f32.mrf.mxu1  ;;  %v595_v39 = vpop.f32.mrf.mxu0 }
 0x113   :  { %v391_v41 = vadd.f32 %v588_v37, %v390_v38 }
 0x114   :  { %v673_v42 = vpop.f32.mrf.mxu1  ;;  %v596_v43 = vpop.f32.mrf.mxu0 }
 0x115   :  { %469 = vxpose.xlu0.b32.start [1/16] (narrow) %v391_v41, 8  ;;  %v597_v51 = vadd.f32 %v596_v43, %v595_v39  ;;  %v627_v39 = vadd.f32 %v853_v25, %v851_v24 }
 0x116   :  { %v598_v44 = vpop.f32.mrf.mxu0  ;;  %v400_v47 = vpop.f32.mrf.mxu1 }
 0x117   :  { %v401_v50 = vadd.f32 %v594_v46, %v400_v47  ;;  %v406_v56 = vadd.f32 %v673_v42, %v597_v51  ;;  %v630_v42 = vadd.f32 %v857_v29, %v855_v27 }
 0x118   :  { %v599_v48 = vpop.f32.mrf.mxu0  ;;  %v676_v52 = vpop.f32.mrf.mxu1 }
 0x119   :  { %470 = vxpose.xlu0.b32.cont [2/16] (narrow) %v396_v45, 8  ;;  %v600_v55 = vadd.f32 %v599_v48, %v598_v44  ;;  %v633_v44 = vadd.f32 %v861_v33, %v859_v31 }
 0x11a   :  { %v601_v49 = vpop.f32.mrf.mxu0  ;;  %v410_v57 = vpop.f32.mrf.mxu1 }
 0x11b   :  { %v411_v61 = vadd.f32 %v600_v55, %v410_v57 }
 0x11c   :  { %v602_v53 = vpop.f32.mrf.mxu0  ;;  %v679_v62 = vpop.f32.mrf.mxu1 }
 0x11d   :  { %471 = vxpose.xlu0.b32.cont [3/16] (narrow) %v401_v50, 8  ;;  %v603_v60 = vadd.f32 %v602_v53, %v601_v49 }
 0x11e   :  { %v604_v54 = vpop.f32.mrf.mxu0  ;;  %v420_v3 = vpop.f32.mrf.mxu1 }
 0x11f   :  { %v416_v2 = vadd.f32 %v676_v52, %v603_v60 }
 0x120   :  { %v605_v58 = vpop.f32.mrf.mxu0  ;;  %v682_v8 = vpop.f32.mrf.mxu1 }
 0x121   :  { %472 = vxpose.xlu0.b32.cont [4/16] (narrow) %v406_v56, 8  ;;  %v606_v1 = vadd.f32 %v605_v58, %v604_v54 }
 0x122   :  { %v607_v59 = vpop.f32.mrf.mxu0  ;;  %v430_v13 = vpop.f32.mrf.mxu1 }
 0x123   :  { %v421_v7 = vadd.f32 %v606_v1, %v420_v3 }
 0x124   :  { %v608_v63 = vpop.f32.mrf.mxu0  ;;  %v685_v17 = vpop.f32.mrf.mxu1 }
 0x125   :  { %473 = vxpose.xlu0.b32.cont [5/16] (narrow) %v411_v61, 8  ;;  %v609_v6 = vadd.f32 %v608_v63, %v607_v59 }
 0x126   :  { %v610_v0 = vpop.f32.mrf.mxu0  ;;  %v440_v21 = vpop.f32.mrf.mxu1 }
 0x127   :  { %v426_v12 = vadd.f32 %v679_v62, %v609_v6 }
 0x128   :  { %v611_v4 = vpop.f32.mrf.mxu0  ;;  %v688_v32 = vpop.f32.mrf.mxu1 }
 0x129   :  { %474 = vxpose.xlu0.b32.cont [6/16] (narrow) %v416_v2, 8  ;;  %v612_v11 = vadd.f32 %v611_v4, %v610_v0  ;;  %v456_v40 = vadd.f32 %v688_v32, %v627_v39 }
 0x12a   :  { %v613_v5 = vpop.f32.mrf.mxu0  ;;  %v450_v35 = vpop.f32.mrf.mxu1 }
 0x12b   :  { %v431_v16 = vadd.f32 %v612_v11, %v430_v13  ;;  %v451_v37 = vadd.f32 %v624_v36, %v450_v35 }
 0x12c   :  { %v614_v9 = vpop.f32.mrf.mxu0  ;;  %v691_v38 = vpop.f32.mrf.mxu1 }
 0x12d   :  { %475 = vxpose.xlu0.b32.cont [7/16] (narrow) %v421_v7, 8  ;;  %v615_v15 = vadd.f32 %v614_v9, %v613_v5  ;;  %v466_v45 = vadd.f32 %v691_v38, %v633_v44 }
 0x12e   :  { %v616_v10 = vpop.f32.mrf.mxu0  ;;  %v460_v41 = vpop.f32.mrf.mxu1 }
 0x12f   :  { %v436_v20 = vadd.f32 %v682_v8, %v615_v15  ;;  %v461_v43 = vadd.f32 %v630_v42, %v460_v41 }
 0x130   :  { %v617_v14 = vpop.f32.mrf.mxu0 }
 0x131   :  { %476 = vxpose.xlu0.b32.cont [8/16] (narrow) %v426_v12, 8  ;;  %v618_v19 = vadd.f32 %v617_v14, %v616_v10 }
 0x132   :  { %v619_v18 = vpop.f32.mrf.mxu0 }
 0x133   :  { %v441_v30 = vadd.f32 %v618_v19, %v440_v21 }
 0x134   :  { %v620_v26 = vpop.f32.mrf.mxu0 }
 0x135   :  { %477 = vxpose.xlu0.b32.cont [9/16] (narrow) %v431_v16, 8  ;;  %v621_v28 = vadd.f32 %v620_v26, %v619_v18 }
 0x137   :  { %v446_v34 = vadd.f32 %v685_v17, %v621_v28 }
 0x139   :  { %478 = vxpose.xlu0.b32.cont [10/16] (narrow) %v436_v20, 8 }
 0x13d   :  { %479 = vxpose.xlu0.b32.cont [11/16] (narrow) %v441_v30, 8 }
 0x141   :  { %480 = vxpose.xlu0.b32.cont [12/16] (narrow) %v446_v34, 8 }
 0x145   :  { %481 = vxpose.xlu0.b32.cont [13/16] (narrow) %v451_v37, 8 }
 0x149   :  { %482 = vxpose.xlu0.b32.cont [14/16] (narrow) %v456_v40, 8 }
 0x14d   :  { %483 = vxpose.xlu0.b32.cont [15/16] (narrow) %v461_v43, 8 }
 0x151   :  { %484 = vxpose.xlu0.b32.end [16/16] (narrow) %v466_v45, 8 }
 0x191   :  { %v485_v22 = vpop.trf.xlu0 }
 0x192   :  { %v501_v23 = vsel %vm175_vm0, %v485_v22, -inf }
 0x193   :  { %v502_v46 = vrot.slane %v501_v23, 4 }
 0x195   :  { %v503_v47 = vmax.f32 %v501_v23, %v502_v46 }
 0x197   :  { %v504_v24 = vrot.slane %v503_v47, 2 }
 0x199   :  { %v505_v25 = vmax.f32 %v503_v47, %v504_v24 }
 0x19b   :  { %v506_v48 = vrot.slane %v505_v25, 1 }
 0x19d   :  { %v507_v49 = vmax.f32 %v505_v25, %v506_v48 }
 0x19f   :  { %v508_v50 = vsub.f32 %v485_v22, %v507_v49 }
 0x1a1   :  { %v509_v51 = vmul.f32 1.442695, %v508_v50 }
 0x1a3   :  { %731 = vpow2.f32 %v509_v51 }
 0x1b0   :  { %v732_v27 = vpop.eup %731 }
 0x1b1   :  { %v511_v29 = vsel %vm175_vm0, %v732_v27, 0.0 }
 0x1b2   :  { %v512_v52 = vrot.slane %v511_v29, 4 }
 0x1b4   :  { %v513_v31 = vadd.f32 %v512_v52, %v511_v29 }
 0x1b6   :  { %v514_v33 = vrot.slane %v513_v31, 2 }
 0x1b8   :  { %v515_v53 = vadd.f32 %v514_v33, %v513_v31 }
 0x1ba   :  { %v516_v54 = vrot.slane %v515_v53, 1 }
 0x1bc   :  { %v517_v55 = vadd.f32 %v516_v54, %v515_v53 }
 0x1be   :  { %733 = vrcp.f32 %v517_v55 }
 0x1cb   :  { %v734_v56 = vpop.eup %733 }
 0x1cc   :  { %v519_v57 = vmul.f32 %v734_v56, %v732_v27 }
 0x1ce   :  { %520 = vst [vmem:[#allocation7] sm:$0xf] %v519_v57 }
 0x1cf   :  { %786 = shalt.err (!%p783_p0)
}
 0x1d0   :  { %530 = dma.vmem_to_hbm [thread:$0]  %s528_s1, 64, %s878_s2, [#allocation4]  }
 0x1d1   :  { %799 = dma.done.wait [#allocation4], 64  }
 0x1d2   :  { %800 = vsyncadd [#allocation4], 4294967232 }
 0x1d3   :  { %534 = vsyncpa [#allocation3], 1 }
 0x1d4   :  { %535 = vsyncpa [#allocation6], 1 }
 0x1d5   :  { %536 = vsyncpa [#allocation4], 1 }

</bundles_post_ra>
